<compile_context>
chip_gen: v7x
topology: tpu7x:2x2x1
jax: 0.10.0
libtpu: 0.0.40
codegen_flags: <defaults>
</compile_context>

<pallas_src>
import functools
import math

import jax
import jax.numpy as jnp
from jax.experimental import pallas as pl
from jax.experimental.pallas import tpu as pltpu


def _round_up(x, m):
    return (x + m - 1) // m * m


def _pad_to(x, shape):
    pads = [(0, t - s) for s, t in zip(x.shape, shape)]
    if all(p == (0, 0) for p in pads):
        return x
    return jnp.pad(x, pads)


def _attend(q_ref, k_ref, v_ref, mask_ref, out_ref, attn_ref, *,
            inv_temperature, attn_type, lk_valid):
    # blocks: q (1,TQ,Dp), k (1,Lkp,Dp), v (1,Lkp,Dvp), mask (1,TQ,Lkp) int8
    q = q_ref[0]
    # fold 1/temperature into q (touches TQ*D elements, not TQ*Lk)
    q = q * jnp.asarray(inv_temperature, q.dtype)
    k = k_ref[0]
    v = v_ref[0]

    # scores on the MXU in native dtype, f32 accumulation, no explicit k.T
    s = jax.lax.dot_general(
        q, k, dimension_numbers=(((1,), (1,)), ((), ())),
        preferred_element_type=jnp.float32)                       # (TQ, Lkp)

    if mask_ref is not None:
        # exact masked_fill(-1e6) semantics from an int8 mask
        s = jnp.where(mask_ref[0] != 0, jnp.float32(-1000000.0), s)

    lkp = s.shape[-1]
    if lk_valid < lkp:
        # neutralize lane-padding key columns (exp -> 0, sigmoid -> 0)
        col = jax.lax.broadcasted_iota(jnp.int32, s.shape, 1)
        s = jnp.where(col >= lk_valid, -jnp.inf, s)

    if attn_type == "softmax":
        m = jnp.max(s, axis=-1, keepdims=True)
        e = jnp.exp(s - m)
        denom = jnp.sum(e, axis=-1, keepdims=True)
        p = e * pl.reciprocal(denom, approx=True)
    else:
        p = jax.nn.sigmoid(s)

    # dropout is identity in eval mode
    # TODO(synk): training-mode dropout (nn.Dropout(0.1)) could be added via
    # pltpu.prng_seed + pltpu.stateful_bernoulli if needed.

    attn_ref[0] = p.astype(attn_ref.dtype)
    out_ref[0] = jnp.dot(p.astype(v.dtype), v,
                         preferred_element_type=jnp.float32).astype(out_ref.dtype)


def _sdpa_kernel(q_ref, k_ref, v_ref, out_ref, attn_ref, *,
                 inv_temperature, attn_type, lk_valid):
    _attend(q_ref, k_ref, v_ref, None, out_ref, attn_ref,
            inv_temperature=inv_temperature, attn_type=attn_type,
            lk_valid=lk_valid)


def _sdpa_kernel_masked(q_ref, k_ref, v_ref, mask_ref, out_ref, attn_ref, *,
                        inv_temperature, attn_type, lk_valid):
    _attend(q_ref, k_ref, v_ref, mask_ref, out_ref, attn_ref,
            inv_temperature=inv_temperature, attn_type=attn_type,
            lk_valid=lk_valid)


def scaled_dot_product_attention(q, k, v, temperature, attn_mask=None,
                                 attn_type="softmax", block_q=256):
    """Pallas equivalent of ScaledDotProductAttention.forward (eval mode).

    q: (B, Lq, D), k: (B, Lk, D), v: (B, Lk, Dv)
    attn_mask: optional (B, Lq, Lk) boolean-like (nonzero => masked out)
    returns (output (B, Lq, Dv), attn (B, Lq, Lk)) in q.dtype
    """
    B, Lq, D = q.shape
    Bk, Lk, Dk = k.shape
    Bv, Lkv, Dv = v.shape
    assert D == Dk and Bk == B and Bv == B and Lkv == Lk

    # q-tile: 256 (feeds the 2x256 MXU on v6e/v7x; also fine on v5e),
    # or the whole (8-rounded) Lq when it is small.
    TQ = min(int(block_q), _round_up(Lq, 8))
    TQ = _round_up(TQ, 8)
    Lq_p = _round_up(Lq, TQ)
    # lane-dense layouts: last dims padded to multiples of 128
    Lk_p = _round_up(Lk, 128)
    D_p = _round_up(D, 128)
    Dv_p = _round_up(Dv, 128)

    qp = _pad_to(q, (B, Lq_p, D_p))
    kp = _pad_to(k, (B, Lk_p, D_p))
    vp = _pad_to(v, (B, Lk_p, Dv_p))

    grid = (B, Lq_p // TQ)

    q_spec = pl.BlockSpec((1, TQ, D_p), lambda b, i: (b, i, 0))
    k_spec = pl.BlockSpec((1, Lk_p, D_p), lambda b, i: (b, 0, 0))   # resident across q tiles
    v_spec = pl.BlockSpec((1, Lk_p, Dv_p), lambda b, i: (b, 0, 0))
    out_spec = pl.BlockSpec((1, TQ, Dv_p), lambda b, i: (b, i, 0))
    attn_spec = pl.BlockSpec((1, TQ, Lk_p), lambda b, i: (b, i, 0))

    out_shapes = (
        jax.ShapeDtypeStruct((B, Lq_p, Dv_p), q.dtype),   # output
        jax.ShapeDtypeStruct((B, Lq_p, Lk_p), q.dtype),   # attn (input dtype)
    )

    compiler_params = pltpu.CompilerParams(
        dimension_semantics=("parallel", "parallel"),
        # raise the scoped-VMEM cap; 64 MiB is within physical VMEM on
        # v5e/v6e (128 MiB) and v7x (64 MiB)
        vmem_limit_bytes=64 * 1024 * 1024,
    )

    kw = dict(inv_temperature=1.0 / float(temperature),
              attn_type=attn_type, lk_valid=Lk)

    if attn_mask is None:
        kernel = functools.partial(_sdpa_kernel, **kw)
        in_specs = [q_spec, k_spec, v_spec]
        args = (qp, kp, vp)
    else:
        mask_i8 = _pad_to(attn_mask.astype(jnp.int8), (B, Lq_p, Lk_p))
        mask_spec = pl.BlockSpec((1, TQ, Lk_p), lambda b, i: (b, i, 0))
        kernel = functools.partial(_sdpa_kernel_masked, **kw)
        in_specs = [q_spec, k_spec, v_spec, mask_spec]
        args = (qp, kp, vp, mask_i8)

    out_p, attn_p = pl.pallas_call(
        kernel,
        out_shape=out_shapes,
        grid=grid,
        in_specs=in_specs,
        out_specs=(out_spec, attn_spec),
        compiler_params=compiler_params,
    )(*args)

    return out_p[:, :Lq, :Dv], attn_p[:, :Lq, :Lk]


def _reference(q, k, v, temperature, attn_mask=None, attn_type="softmax"):
    s = jnp.einsum("bqd,bkd->bqk", q.astype(jnp.float32),
                   k.astype(jnp.float32)) / temperature
    if attn_mask is not None:
        s = jnp.where(attn_mask != 0, -1000000.0, s)
    if attn_type == "softmax":
        p = jax.nn.softmax(s, axis=2)
    else:
        p = jax.nn.sigmoid(s)
    out = jnp.einsum("bqk,bkd->bqd", p, v.astype(jnp.float32))
    return out, p


if __name__ == "__main__":
    key = jax.random.PRNGKey(0)
    kq, kk, kv, km = jax.random.split(key, 4)

    B, Lq, Lk, D, Dv = 2, 8, 8, 32, 32
    temperature = math.sqrt(D)

    q = jax.random.normal(kq, (B, Lq, D), dtype=jnp.float32)
    k = jax.random.normal(kk, (B, Lk, D), dtype=jnp.float32)
    v = jax.random.normal(kv, (B, Lk, Dv), dtype=jnp.float32)
    attn_mask = (jax.random.uniform(km, (B, Lq, Lk)) < 0.25)

    # unmasked softmax attention
    out, attn = jax.block_until_ready(
        scaled_dot_product_attention(q, k, v, temperature))
    ref_out, ref_attn = _reference(q, k, v, temperature)
    assert jnp.allclose(out, ref_out, atol=2e-3, rtol=2e-3)
    assert jnp.allclose(attn, ref_attn, atol=2e-3, rtol=2e-3)

    # masked softmax attention
    out_m, attn_m = jax.block_until_ready(
        scaled_dot_product_attention(q, k, v, temperature, attn_mask=attn_mask))
    ref_out_m, ref_attn_m = _reference(q, k, v, temperature, attn_mask=attn_mask)
    assert jnp.allclose(out_m, ref_out_m, atol=2e-3, rtol=2e-3)
    assert jnp.allclose(attn_m, ref_attn_m, atol=2e-3, rtol=2e-3)

    # sigmoid attention path
    out_s, attn_s = jax.block_until_ready(
        scaled_dot_product_attention(q, k, v, temperature, attn_type="sigmoid"))
    ref_out_s, ref_attn_s = _reference(q, k, v, temperature, attn_type="sigmoid")
    assert jnp.allclose(out_s, ref_out_s, atol=2e-3, rtol=2e-3)
    assert jnp.allclose(attn_s, ref_attn_s, atol=2e-3, rtol=2e-3)

    # bf16 inputs go straight to the MXU (f32 accumulation) -> looser tolerance
    qb, kb, vb = (x.astype(jnp.bfloat16) for x in (q, k, v))
    out_b, attn_b = jax.block_until_ready(
        scaled_dot_product_attention(qb, kb, vb, temperature, attn_mask=attn_mask))
    assert jnp.allclose(out_b.astype(jnp.float32), ref_out_m, atol=5e-2, rtol=5e-2)
    assert jnp.allclose(attn_b.astype(jnp.float32), ref_attn_m, atol=5e-2, rtol=5e-2)

    print("KERNEL_OK")
</pallas_src>

<mosaic_0001>
module attributes {stable_mosaic.version = 11 : i64} {
  func.func @_sdpa_kernel(%arg0: i32, %arg1: i32, %arg2: memref<1x8x128xf32, #tpu.memory_space<vmem>>, %arg3: memref<1x128x128xf32, #tpu.memory_space<vmem>>, %arg4: memref<1x128x128xf32, #tpu.memory_space<vmem>>, %arg5: memref<1x8x128xf32, #tpu.memory_space<vmem>>, %arg6: memref<1x8x128xf32, #tpu.memory_space<vmem>>) attributes {dimension_semantics = [#tpu.dimension_semantics<parallel>, #tpu.dimension_semantics<parallel>], iteration_bounds = array<i64: 2, 1>, scalar_prefetch = 0 : i64, scratch_operands = 0 : i64, tpu.core_type = #tpu.core_type<tc>, window_params = [{transform_indices = @transform_0, window_bounds = array<i64: 1, 8, 128>}, {transform_indices = @transform_1, window_bounds = array<i64: 1, 128, 128>}, {transform_indices = @transform_2, window_bounds = array<i64: 1, 128, 128>}, {transform_indices = @transform_3, window_bounds = array<i64: 1, 8, 128>}, {transform_indices = @transform_4, window_bounds = array<i64: 1, 8, 128>}]} {
    %c0 = arith.constant 0 : index
    %c0_0 = arith.constant 0 : index
    %c0_1 = arith.constant 0 : index
    %0 = vector.load %arg2[%c0, %c0_0, %c0_1] : memref<1x8x128xf32, #tpu.memory_space<vmem>>, vector<1x8x128xf32>
    %1 = vector.shape_cast %0 : vector<1x8x128xf32> to vector<8x128xf32>
    %cst = arith.constant 0.176776692 : f32
    %2 = vector.broadcast %cst : f32 to vector<8x128xf32>
    %3 = arith.mulf %1, %2 : vector<8x128xf32>
    %c0_2 = arith.constant 0 : index
    %c0_3 = arith.constant 0 : index
    %c0_4 = arith.constant 0 : index
    %4 = vector.load %arg3[%c0_2, %c0_3, %c0_4] : memref<1x128x128xf32, #tpu.memory_space<vmem>>, vector<1x128x128xf32>
    %5 = vector.shape_cast %4 : vector<1x128x128xf32> to vector<128x128xf32>
    %c0_5 = arith.constant 0 : index
    %c0_6 = arith.constant 0 : index
    %c0_7 = arith.constant 0 : index
    %6 = vector.load %arg4[%c0_5, %c0_6, %c0_7] : memref<1x128x128xf32, #tpu.memory_space<vmem>>, vector<1x128x128xf32>
    %7 = vector.shape_cast %6 : vector<1x128x128xf32> to vector<128x128xf32>
    %cst_8 = arith.constant dense<0.000000e+00> : vector<8x128xf32>
    %8 = tpu.matmul %3, %5, %cst_8 {dimension_numbers = #tpu.dot_dimension_numbers<[1], [1], [0], [0], [0, 0, 1, 0], [], []>} : vector<8x128xf32>, vector<128x128xf32>, vector<8x128xf32> -> vector<8x128xf32>
    %9 = tpu.iota {dimensions = array<i32: 1>} : vector<8x128xi32>
    %c8_i32 = arith.constant 8 : i32
    %10 = vector.broadcast %c8_i32 : i32 to vector<8x128xi32>
    %11 = arith.cmpi sge, %9, %10 : vector<8x128xi32>
    %cst_9 = arith.constant 0xFF800000 : f32
    %12 = vector.broadcast %cst_9 : f32 to vector<8x128xf32>
    %13 = arith.select %11, %12, %8 : vector<8x128xi1>, vector<8x128xf32>
    %cst_10 = arith.constant dense<0xFF800000> : vector<8xf32>
    %14 = vector.multi_reduction <maximumf>, %13, %cst_10 [1] : vector<8x128xf32> to vector<8xf32>
    %15 = vector.shape_cast %14 : vector<8xf32> to vector<8x1xf32>
    %16 = vector.broadcast %15 : vector<8x1xf32> to vector<8x128xf32>
    %17 = arith.subf %13, %16 : vector<8x128xf32>
    %18 = math.exp %17 : vector<8x128xf32>
    %cst_11 = arith.constant dense<0.000000e+00> : vector<8xf32>
    %19 = vector.multi_reduction <add>, %18, %cst_11 [1] : vector<8x128xf32> to vector<8xf32>
    %20 = vector.shape_cast %19 : vector<8xf32> to vector<8x1xf32>
    %21 = tpu.reciprocal %20 {approx = true} : vector<8x1xf32> -> vector<8x1xf32>
    %22 = vector.broadcast %21 : vector<8x1xf32> to vector<8x128xf32>
    %23 = arith.mulf %18, %22 : vector<8x128xf32>
    %c0_12 = arith.constant 0 : index
    %c0_13 = arith.constant 0 : index
    %c0_14 = arith.constant 0 : index
    %24 = vector.load %arg6[%c0_12, %c0_13, %c0_14] : memref<1x8x128xf32, #tpu.memory_space<vmem>>, vector<1x8x128xf32>
    %25 = vector.shape_cast %24 : vector<1x8x128xf32> to vector<8x128xf32>
    %26 = vector.shape_cast %23 : vector<8x128xf32> to vector<1x8x128xf32>
    tpu.vector_store %arg6[%c0_12, %c0_13, %c0_14], %26 {strides = array<i32>} : memref<1x8x128xf32, #tpu.memory_space<vmem>>, vector<1x8x128xf32>,
    %cst_15 = arith.constant dense<0.000000e+00> : vector<8x128xf32>
    %27 = tpu.matmul %23, %7, %cst_15 {dimension_numbers = #tpu.dot_dimension_numbers<[1], [0], [0], [1], [0, 0, 1, 1], [], []>} : vector<8x128xf32>, vector<128x128xf32>, vector<8x128xf32> -> vector<8x128xf32>
    %c0_16 = arith.constant 0 : index
    %c0_17 = arith.constant 0 : index
    %c0_18 = arith.constant 0 : index
    %28 = vector.load %arg5[%c0_16, %c0_17, %c0_18] : memref<1x8x128xf32, #tpu.memory_space<vmem>>, vector<1x8x128xf32>
    %29 = vector.shape_cast %28 : vector<1x8x128xf32> to vector<8x128xf32>
    %30 = vector.shape_cast %27 : vector<8x128xf32> to vector<1x8x128xf32>
    tpu.vector_store %arg5[%c0_16, %c0_17, %c0_18], %30 {strides = array<i32>} : memref<1x8x128xf32, #tpu.memory_space<vmem>>, vector<1x8x128xf32>,
    return
  }
  func.func @transform_0(%arg0: i32, %arg1: i32) -> (i32, i32, i32) {
    %c0_i32 = arith.constant 0 : i32
    %c0_i32_0 = arith.constant 0 : i32
    return %arg0, %arg1, %c0_i32 : i32, i32, i32
  }
  func.func @transform_1(%arg0: i32, %arg1: i32) -> (i32, i32, i32) {
    %c0_i32 = arith.constant 0 : i32
    %c0_i32_0 = arith.constant 0 : i32
    %c0_i32_1 = arith.constant 0 : i32
    return %arg0, %c0_i32, %c0_i32_0 : i32, i32, i32
  }
  func.func @transform_2(%arg0: i32, %arg1: i32) -> (i32, i32, i32) {
    %c0_i32 = arith.constant 0 : i32
    %c0_i32_0 = arith.constant 0 : i32
    %c0_i32_1 = arith.constant 0 : i32
    return %arg0, %c0_i32, %c0_i32_0 : i32, i32, i32
  }
  func.func @transform_3(%arg0: i32, %arg1: i32) -> (i32, i32, i32) {
    %c0_i32 = arith.constant 0 : i32
    %c0_i32_0 = arith.constant 0 : i32
    return %arg0, %arg1, %c0_i32 : i32, i32, i32
  }
  func.func @transform_4(%arg0: i32, %arg1: i32) -> (i32, i32, i32) {
    %c0_i32 = arith.constant 0 : i32
    %c0_i32_0 = arith.constant 0 : i32
    return %arg0, %arg1, %c0_i32 : i32, i32, i32
  }
}

</mosaic_0001>

<bundles_post_ra>
// kernel: tpu_custom_call.1
= control target key start
LH: loop header
LB: loop body
LE: loop exit
PB: predicated region body
PF: predicated region fallthrough
CT: control target
= control target key end

     0   :  { %s1559_s0 = inlined_call_operand.hbm [shape: f32[2,8,128], index: 0, kind: input, shape index: {}]   ;;  %s1560_s1 = inlined_call_operand.hbm [shape: f32[2,128,128], index: 1, kind: input, shape index: {}]   ;;  %s1561_s2 = inlined_call_operand.hbm [shape: f32[2,128,128], index: 2, kind: input, shape index: {}]   ;;  %s1562_s3 = inlined_call_operand.hbm [shape: f32[2,8,128], index: 3, kind: output, shape index: {0}]   ;;  %s1563_s4 = inlined_call_operand.hbm [shape: f32[2,8,128], index: 4, kind: output, shape index: {1}]  }
   0x1   :  { %1573 = sst [smem:[#allocation19_spill]] %s1560_s1 }
   0x2   :  { %10 = vsyncpa [#allocation3], 0 }
   0x3   :  { %12 = vsyncpa [#allocation3 + $0x1], 0 }
   0x4   :  { %13 = vsyncpa [#allocation6], 0 }
   0x5   :  { %15 = vsyncpa [#allocation6 + $0x1], 0 }
   0x6   :  { %16 = vsyncpa [#allocation4], 0 }
   0x7   :  { %18 = vsyncpa [#allocation4 + $0x1], 0 }
   0x8   :  { %19 = vsyncpa [#allocation10], 0 }
   0x9   :  { %21 = vsyncpa [#allocation10 + $0x1], 0  ;;  %s1208_s15 = smov 0   ;;  %s1210_s16 = smov 0  }
   0xa   :  { %s1212_s17 = smov 0   ;;  %s1214_s18 = smov 0  }
   0xb   :  { %s1216_s19 = smov 0   ;;  %s1218_s20 = smov 0  }
   0xc LB: > { %1574 = sst [smem:[#allocation15_spill]] %s1159_s17  ;;  %s1239_s21 = sadd.s32 4294967295, %s1171_s20   ;;  %s1171_s20 = sphi %s1218_s20, %s27_s20   ;;  %s1167_s19 = sphi %s1216_s19, %s1601_s19   ;;  %s1163_s18 = sphi %s1214_s18, %s1600_s18   ;;  %s1159_s17 = sphi %s1212_s17, %s1596_s17   ;;  %s1155_s16 = sphi %s1210_s16, %s1599_s16   ;;  %s1151_s15 = sphi %s1208_s15, %s1598_s15  }
   0xd   : > { %s700_s22 = sadd.s32 4294967294, %s1171_s20   ;;  %s39_s23 = sadd.s32 1, %s1167_s19 }
   0xe   : > { %s48_s24 = sadd.s32 1, %s1159_s17  ;;  %p41_p0 = scmp.ge.s32.totalorder %s39_s23, 2 }
   0xf   : > { %p55_p1 = scmp.ne.s32.totalorder %s1159_s17, %s1155_s16  ;;  %p56_p2 = scmp.eq.s32.totalorder %s1171_s20, 0 }
  0x10   : > { %p61_p3 = scmp.ne.s32.totalorder %s1155_s16, %s1151_s15  ;;  %s1603_s23 = smov (%p41_p0, %s39_s23), 0 }
  0x11   : > { %1575 = sst [smem:[#allocation16_spill]] %s1603_s23  ;;  %p1251_p4 = por %p56_p2, %p55_p1 }
  0x12   : > { %p62_p5 = scmp.eq.s32.totalorder %s1239_s21, 0  ;;  %s43_s26 = ssub.s32 %s1167_s19, %s1603_s23 }
  0x13   : > { %p139_p6 = scmp.eq.s32.totalorder %s1239_s21, 1  ;;  %p46_p7 = scmp.eq.s32.totalorder %s43_s26, 0 }
  0x14   : > { %p1259_p8 = por %p62_p5, %p61_p3  ;;  %p145_p10 = scmp.eq.s32.totalorder %s700_s22, 1 }
  0x15   : > { %p1263_p9 = por %p139_p6, %p55_p1  ;;  %p904_p13 = scmp.lt.s32.totalorder %s1171_s20, 2 }
  0x16   : > { %s1577_s27 = scalar_select %p1259_p8, 1, 0 }
  0x17   : > { %s1578_s28 = scalar_select %p1263_p9, 1, 0 }
  0x18   : > { %s1268_s29 = scalar_select %p46_p7, %s1159_s17, %s48_s24  }
  0x19   : > { %p1270_p11 = por %p145_p10, %p61_p3  ;;  %s1277_s5 = sand.u32 1, %s1159_s17  }
  0x1a   : > { %1579 = sst [smem:[#allocation17_spill]] %s1268_s29  ;;  %s212_s6 = sand.u32 1, %s1171_s20  }
  0x1b   : > { %s1580_s30 = scalar_select %p1270_p11, 1, 0 }
  0x1c   : > { %s1564_s7 = sshll.u32 %s1277_s5, 7  ;;  %p1283_p0 = pnand %p904_p13, %p1251_p4 }
  0x1d   : > { %1581 = sst [smem:[#allocation18_spill]] %s1580_s30  ;;  %s723_s9 = sshll.u32 %s1167_s19, 11 }
  0x1e   : > { %s1582_s8 = scalar_select %p1283_p0, 1, 0 }
  0x1f   : > { %s1583_s1 = sld [smem:[#allocation19_spill]]  ;;  %s216_s13 = scalar_lea.vmem [#allocation5], %s1564_s7 }
  0x20   : > { %s223_s14 = sshll.u32 %s216_s13, 4  ;;  %s1299_s22 = scalar_lea.sflag [#allocation6], %s212_s6  ;;  %s1297_s14 = int_to_ptr.vmem [resolvable:$true] %s223_s14 }
  0x21   : > { %p1305_p2 = pneg %p1283_p0 }
  0x25   : > { %s1293_s12 = scalar_lea.hbm %s1583_s1, %s723_s9  ;;  %s968_s11 = scalar_lea.hbm %s1583_s1, 4096 }
  0x26   : > { %s963_s24 = scalar_lea.hbm %s1293_s12, 2048  ;;  %p969_p5 = scmp.lt.u32.totalorder %s1293_s12, %s1583_s1 }
  0x27   : > { %p964_p1 = scmp.ne.s32.totalorder %s1293_s12, %s963_s24  ;;  %p970_p6 = scmp.lt.u32.totalorder %s968_s11, %s963_s24 }
  0x28   : > { %p972_p10 = scmp.lt.u32.totalorder %s963_s24, %s1293_s12 }
  0x29   : > { %p966_p3 = pnand %p1305_p2, %p964_p1  ;;  %p971_p7 = por %p970_p6, %p969_p5 }
  0x2b   : > { %p967_p4 = pneg %p966_p3  ;;  %p973_p13 = por %p972_p10, %p971_p7 }
  0x2d   : > { %p974_p12 = pnand %p973_p13, %p967_p4 }
  0x2f   : > { %977 = shalt.err (!%p974_p12)
}
  0x30   : > { %s978_s6 = scalar_lea.vmem %s1297_s14, 2048  ;;  %s1173_s26 = smov [#allocation5]  }
  0x31   : > { %p979_p1 = scmp.ne.s32.totalorder %s1297_s14, %s978_s6  ;;  %s983_s10 = sshll.u32 %s1173_s26, 4  ;;  %s984_s10 = int_to_ptr.vmem [resolvable:$false] %s983_s10 }
  0x32   : > { %s985_s7 = scalar_lea.vmem %s984_s10, 4096  ;;  %p986_p9 = scmp.lt.s32.totalorder %s1297_s14, %s984_s10 }
  0x33   : > { %p981_p3 = pnand %p979_p1, %p1305_p2  ;;  %p987_p8 = scmp.lt.s32.totalorder %s985_s7, %s978_s6 }
  0x35   : > { %p982_p11 = pneg %p981_p3  ;;  %p988_p5 = por %p987_p8, %p986_p9 }
  0x37   : > { %p989_p6 = pnand %p988_p5, %p982_p11 }
  0x39   : > { %992 = shalt.err (!%p989_p6)
}
  0x3a   : > { %s1570_s24 = smov 128   ;;  %s1175_s11 = smov 8  }
  0x3b   : > { %893 = dma.hbm_to_vmem [thread:$0]  (!%p1283_p0), %s1293_s12, 2048, %s1297_s14, %s1299_s22, %s1570_s24, %s1570_s24, %s1175_s11  }
  0x3c   : > { %s1337_s26 = scalar_lea.hbm %s1561_s2, %s723_s9  ;;  %p711_p8 = scmp.ge.s32.totalorder %s1171_s20, 1 }
  0x3d   : > { %s1585_s10 = sshll.u32 %s1277_s5, 7  ;;  %p252_p9 = scmp.lt.s32.totalorder %s1171_s20, 3 }
  0x3e   : > { %s237_s7 = scalar_lea.vmem [#allocation7], %s1585_s10  ;;  %s703_s29 = sshll.u32 %s1277_s5, 3 }
  0x3f   : > { %s244_s1 = sshll.u32 %s237_s7, 4  ;;  %p1343_p11 = pnand %p711_p8, %p252_p9  ;;  %s1354_s1 = int_to_ptr.vmem [resolvable:$true] %s244_s1 }
  0x40   : > { %s704_s17 = sshll.u32 %s1167_s19, 7  ;;  %s197_s9 = scalar_lea.vmem [#allocation2], %s703_s29 }
  0x41   : > { %s1586_s23 = scalar_select %p1343_p11, 1, 0 }
  0x42   : > { %s1352_s14 = scalar_lea.hbm %s1559_s0, %s704_s17  ;;  %s205_s13 = sshll.u32 %s197_s9, 4  ;;  %s206_s13 = int_to_ptr.vmem [resolvable:$true] %s205_s13 }
  0x43   : > { %s194_s6 = scalar_lea.sflag [#allocation3], %s1277_s5  ;;  %s993_s10 = scalar_lea.hbm %s1352_s14, 128 }
  0x44   : > { %p994_p12 = scmp.ne.s32.totalorder %s1352_s14, %s993_s10  ;;  %s998_s17 = scalar_lea.hbm %s1559_s0, 256 }
  0x45   : > { %p999_p10 = scmp.lt.u32.totalorder %s1352_s14, %s1559_s0  ;;  %p1000_p13 = scmp.lt.u32.totalorder %s998_s17, %s993_s10 }
  0x46   : > { %p996_p4 = pnand %p994_p12, %p1305_p2  ;;  %p1002_p3 = scmp.lt.u32.totalorder %s993_s10, %s1352_s14 }
  0x47   : > { %p1001_p1 = por %p1000_p13, %p999_p10 }
  0x48   : > { %p997_p7 = pneg %p996_p4 }
  0x49   : > { %p1003_p5 = por %p1002_p3, %p1001_p1 }
  0x4b   : > { %p1004_p6 = pnand %p1003_p5, %p997_p7 }
  0x4d   : > { %1007 = shalt.err (!%p1004_p6)
}
  0x4e   : > { %s1008_s29 = scalar_lea.vmem %s206_s13, 128  ;;  %s1176_s5 = smov [#allocation2]  }
  0x4f   : > { %p1009_p8 = scmp.ne.s32.totalorder %s206_s13, %s1008_s29  ;;  %s1013_s9 = sshll.u32 %s1176_s5, 4  ;;  %s1014_s9 = int_to_ptr.vmem [resolvable:$false] %s1013_s9 }
  0x50   : > { %s1015_s24 = scalar_lea.vmem %s1014_s9, 256  ;;  %p1016_p4 = scmp.lt.s32.totalorder %s206_s13, %s1014_s9 }
  0x51   : > { %p1011_p9 = pnand %p1009_p8, %p1305_p2  ;;  %p1017_p11 = scmp.lt.s32.totalorder %s1015_s24, %s1008_s29 }
  0x53   : > { %p1012_p12 = pneg %p1011_p9  ;;  %p1018_p0 = por %p1017_p11, %p1016_p4 }
  0x55   : > { %p1019_p10 = pnand %p1018_p0, %p1012_p12 }
  0x57   : > { %1022 = shalt.err (!%p1019_p10)
}
  0x58   : > { %p1587_p13 = scmp.ne.s32.totalorder %s1582_s8, 0  ;;  %s1023_s10 = scalar_lea.hbm %s1337_s26, 2048 }
  0x59   : > { %p1024_p7 = scmp.ne.s32.totalorder %s1337_s26, %s1023_s10  ;;  %s1028_s30 = scalar_lea.hbm %s1561_s2, 4096 }
  0x5a   : > { %890 = dma.hbm_to_vmem [thread:$0]  (!%p1587_p13), %s1352_s14, 128, %s206_s13, %s194_s6  }
  0x5b   : > { %p1026_p1 = pnand %p1024_p7, %p1305_p2  ;;  %p1029_p0 = scmp.lt.u32.totalorder %s1337_s26, %s1561_s2 }
  0x5c   : > { %p1030_p11 = scmp.lt.u32.totalorder %s1028_s30, %s1023_s10  ;;  %p1032_p6 = scmp.lt.u32.totalorder %s1023_s10, %s1337_s26 }
  0x5d   : > { %p1027_p3 = pneg %p1026_p1 }
  0x5e   : > { %p1031_p5 = por %p1030_p11, %p1029_p0 }
  0x60   : > { %p1033_p8 = por %p1032_p6, %p1031_p5 }
  0x62   : > { %p1034_p9 = pnand %p1033_p8, %p1027_p3 }
  0x64   : > { %1037 = shalt.err (!%p1034_p9)
}
  0x65   : > { %s1038_s14 = scalar_lea.vmem %s1354_s1, 2048  ;;  %s1177_s13 = smov [#allocation7]  }
  0x66   : > { %p1039_p12 = scmp.ne.s32.totalorder %s1354_s1, %s1038_s14  ;;  %s1043_s6 = sshll.u32 %s1177_s13, 4  ;;  %s1044_s6 = int_to_ptr.vmem [resolvable:$false] %s1043_s6 }
  0x67   : > { %s1045_s5 = scalar_lea.vmem %s1044_s6, 4096  ;;  %p1046_p7 = scmp.lt.s32.totalorder %s1354_s1, %s1044_s6 }
  0x68   : > { %p1041_p4 = pnand %p1039_p12, %p1305_p2  ;;  %p1047_p1 = scmp.lt.s32.totalorder %s1045_s5, %s1038_s14 }
  0x6a   : > { %p1042_p10 = pneg %p1041_p4  ;;  %p1048_p0 = por %p1047_p1, %p1046_p7 }
  0x6c   : > { %p1049_p11 = pnand %p1048_p0, %p1042_p10 }
  0x6e   : > { %1052 = shalt.err (!%p1049_p11)
}
  0x6f   : > { %s1588_s9 = smov 128   ;;  %p1589_p2 = scmp.ne.s32.totalorder %s1586_s23, 0 }
  0x70   : > { %896 = dma.hbm_to_vmem [thread:$0]  (!%p1587_p13), %s1337_s26, 2048, %s1354_s1, %s1299_s22, %s1588_s9, %s1588_s9, %s1175_s11  }
  0x71   : > { %256 = sbr.rel (%p1589_p2) target bundleno = 941 (0x3ad), region = 32  ;;  %s1402_s25 = sand.u32 (!%p1589_p2), 1, %s1155_s16  }
  0x72   : > { %s1405_s24 = sshll.u32 (!%p1589_p2), %s1402_s25, 3  ;;  %s259_s8 = scalar_lea.sflag (!%p1589_p2), [#allocation3], %s1402_s25 }
  0x73   : > { %s262_s10 = scalar_lea.vmem (!%p1589_p2), [#allocation2], %s1405_s24  ;;  %p1590_p3 = scmp.ne.s32.totalorder (!%p1589_p2), %s1577_s27, 0 }
  0x78   : > { %1134 = dma.done.wait (%p1590_p3), %s259_s8, 128  }
  0x79   : > { %1136 = vsyncadd (%p1590_p3), %s259_s8, 4294967168  ;;  %s267_s1 = sand.u32 1, %s1239_s21   ;;  %s713_s23 = sshll.u32 %s1402_s25, 7 }
  0x7a   : > { %s268_s22 = scalar_lea.sflag [#allocation6], %s267_s1  ;;  %s1417_s11 = scalar_lea.vmem [#allocation5], %s713_s23 }
  0x7b   : > { %1138 = dma.done.wait (%p1590_p3), %s268_s22, 4096  }
  0x7c   : > { %1140 = vsyncadd (%p1590_p3), %s268_s22, 4294963200  ;;  %v1178_v0 = vmov 0.0|0.0   ;;  %vm1179_vm0 = vmmov 0   ;;  %v1180_v1 = vmov 0.0   ;;  %v322_v2 = vld [vmem:[%s1417_s11] sm:$0xff]  ;;  %v323_v3 = vld [vmem:[%s1417_s11 + $0x8] sm:$0xff]  ;;  %v424_v28 = vlaneseq }
  0x7d   : > { %829 = vmatprep.subr.bf16.mxu0 %v1178_v0  ;;  %791 = vmatprep.mubr.msk.f32.mxu0 %vm1179_vm0, %v1180_v1  ;;  %v830_v4 = vpack.c.bf16 %v323_v3, %v322_v2  ;;  %v324_v5 = vld [vmem:[%s1417_s11 + $0x10] sm:$0xff]  ;;  %v325_v6 = vld [vmem:[%s1417_s11 + $0x18] sm:$0xff]  ;;  %v326_v8 = vld [vmem:[%s1417_s11 + $0x20] sm:$0xff]  ;;  %s1452_s21 = scalar_lea.vmem [#allocation7], %s713_s23  ;;  %s319_s27 = scalar_lea.vmem [#allocation9], %s1405_s24 }
  0x7e   : > { %853 = vmatprep.subr.bf16.mxu1 %v1178_v0  ;;  %826 = vmatprep.mubr.msk.f32.mxu1 %vm1179_vm0, %v1180_v1  ;;  %v833_v7 = vpack.c.bf16 %v325_v6, %v324_v5  ;;  %v327_v9 = vld [vmem:[%s1417_s11 + $0x28] sm:$0xff]  ;;  %v328_v11 = vld [vmem:[%s1417_s11 + $0x30] sm:$0xff]  ;;  %v329_v12 = vld [vmem:[%s1417_s11 + $0x38] sm:$0xff]  ;;  %v425_v29 = vand.u32 127, %v424_v28  ;;  %s719_s26 = sshll.u32 %s1163_s18, 7  ;;  %s543_s12 = sshll.u32 %s319_s27, 4  ;;  %s544_s12 = int_to_ptr.vmem [resolvable:$true] %s543_s12 }
  0x7f   : > { %831 = vmatpush3.bf16.xpose.msra.mxu0 %v830_v4  ;;  %v836_v10 = vpack.c.bf16 %v327_v9, %v326_v8  ;;  %v839_v13 = vpack.c.bf16 %v329_v12, %v328_v11  ;;  %v330_v14 = vld [vmem:[%s1417_s11 + $0x40] sm:$0xff]  ;;  %v331_v15 = vld [vmem:[%s1417_s11 + $0x48] sm:$0xff]  ;;  %v332_v17 = vld [vmem:[%s1417_s11 + $0x50] sm:$0xff]  ;;  %s1484_s30 = scalar_lea.hbm %s1563_s4, %s719_s26  ;;  %s515_s29 = scalar_lea.sflag [#allocation10], %s1402_s25 }
  0x80   : > { %832 = vmatprep.subr.bf16.mxu0 %v1178_v0  ;;  %v842_v16 = vpack.c.bf16 %v331_v15, %v330_v14  ;;  %v333_v18 = vld [vmem:[%s1417_s11 + $0x58] sm:$0xff]  ;;  %v334_v20 = vld [vmem:[%s1417_s11 + $0x60] sm:$0xff]  ;;  %v335_v21 = vld [vmem:[%s1417_s11 + $0x68] sm:$0xff]  ;;  %vm426_vm1 = vcmp.ge.s32.totalorder %v425_v29, 8  ;;  %s1053_s14 = scalar_lea.vmem %s544_s12, 128  ;;  %p1591_p5 = scmp.ne.s32.totalorder %s1578_s28, 0 }
  0x81   : > { %v845_v19 = vpack.c.bf16 %v333_v18, %v332_v17  ;;  %v848_v22 = vpack.c.bf16 %v335_v21, %v334_v20  ;;  %v336_v23 = vld [vmem:[%s1417_s11 + $0x70] sm:$0xff]  ;;  %v337_v24 = vld [vmem:[%s1417_s11 + $0x78] sm:$0xff]  ;;  %v338_v33 = vld [vmem:[%s1452_s21] sm:$0xff]  ;;  %p1054_p13 = scmp.ne.s32.totalorder %s544_s12, %s1053_s14  ;;  %s1181_s13 = smov [#allocation9]  }
  0x82   : > { %v851_v25 = vpack.c.bf16 %v337_v24, %v336_v23  ;;  %v320_v26 = vld [vmem:[%s262_s10] sm:$0xff]  ;;  %v339_v34 = vld [vmem:[%s1452_s21 + $0x8] sm:$0xff]  ;;  %v342_v39 = vld [vmem:[%s1452_s21 + $0x20] sm:$0xff]  ;;  %s1057_s6 = sshll.u32 %s1181_s13, 4  ;;  %s1058_s6 = int_to_ptr.vmem [resolvable:$false] %s1057_s6 }
  0x83   : > { %v321_v27 = vmul.f32 0.17677669, %v320_v26  ;;  %v340_v35 = vld [vmem:[%s1452_s21 + $0x10] sm:$0xff]  ;;  %v854_v36 = vpack.c.bf16 %v339_v34, %v338_v33  ;;  %v341_v37 = vld [vmem:[%s1452_s21 + $0x18] sm:$0xff]  ;;  %v343_v40 = vld [vmem:[%s1452_s21 + $0x28] sm:$0xff]  ;;  %p1055_p6 = pnand %p1054_p13, %p1591_p5  ;;  %s1059_s5 = scalar_lea.vmem %s1058_s6, 256 }
  0x84   : > { %v857_v38 = vpack.c.bf16 %v341_v37, %v340_v35  ;;  %v860_v41 = vpack.c.bf16 %v343_v40, %v342_v39  ;;  %v344_v42 = vld [vmem:[%s1452_s21 + $0x30] sm:$0xff]  ;;  %v345_v43 = vld [vmem:[%s1452_s21 + $0x38] sm:$0xff]  ;;  %v346_v45 = vld [vmem:[%s1452_s21 + $0x40] sm:$0xff]  ;;  %p1060_p9 = scmp.lt.s32.totalorder %s544_s12, %s1058_s6  ;;  %p1061_p12 = scmp.lt.s32.totalorder %s1059_s5, %s1053_s14 }
  0x85   : > { %855 = vmatpush3.bf16.msra.mxu1 %v854_v36  ;;  %v863_v44 = vpack.c.bf16 %v345_v43, %v344_v42  ;;  %v347_v46 = vld [vmem:[%s1452_s21 + $0x48] sm:$0xff]  ;;  %v348_v52 = vld [vmem:[%s1452_s21 + $0x50] sm:$0xff]  ;;  %v349_v53 = vld [vmem:[%s1452_s21 + $0x58] sm:$0xff]  ;;  %p1056_p8 = pneg %p1055_p6 }
  0x86   : > { %856 = vmatprep.subr.bf16.mxu1 %v1178_v0  ;;  %v866_v47 = vpack.c.bf16 %v347_v46, %v346_v45  ;;  %v869_v54 = vpack.c.bf16 %v349_v53, %v348_v52  ;;  %v350_v55 = vld [vmem:[%s1452_s21 + $0x60] sm:$0xff]  ;;  %v351_v56 = vld [vmem:[%s1452_s21 + $0x68] sm:$0xff]  ;;  %v352_v58 = vld [vmem:[%s1452_s21 + $0x70] sm:$0xff]  ;;  %p1062_p4 = por %p1061_p12, %p1060_p9 }
  0x87   : > { %834 = vmatpush3.bf16.xpose.msra.mxu0 %v833_v7  ;;  %v872_v57 = vpack.c.bf16 %v351_v56, %v350_v55  ;;  %v353_v59 = vld [vmem:[%s1452_s21 + $0x78] sm:$0xff] }
  0x88   : > { %835 = vmatprep.subr.bf16.mxu0 %v1178_v0  ;;  %v875_v60 = vpack.c.bf16 %v353_v59, %v352_v58  ;;  %p1063_p10 = pnand %p1062_p4, %p1056_p8 }
  0x89   : > { %858 = vmatpush3.bf16.msra.mxu1 %v857_v38 }
  0x8a   : > { %859 = vmatprep.subr.bf16.mxu1 %v1178_v0 }
  0x8d   : > { %861 = vmatpush3.bf16.msra.mxu1 %v860_v41 }
  0x8e   : > { %862 = vmatprep.subr.bf16.mxu1 %v1178_v0 }
  0x8f   : > { %837 = vmatpush3.bf16.xpose.msra.mxu0 %v836_v10 }
  0x90   : > { %838 = vmatprep.subr.bf16.mxu0 %v1178_v0 }
  0x91   : > { %864 = vmatpush3.bf16.msra.mxu1 %v863_v44 }
  0x92   : > { %865 = vmatprep.subr.bf16.mxu1 %v1178_v0 }
  0x95   : > { %867 = vmatpush3.bf16.msra.mxu1 %v866_v47 }
  0x96   : > { %868 = vmatprep.subr.bf16.mxu1 %v1178_v0 }
  0x97   : > { %840 = vmatpush3.bf16.xpose.msra.mxu0 %v839_v13 }
  0x98   : > { %841 = vmatprep.subr.bf16.mxu0 %v1178_v0 }
  0x99   : > { %870 = vmatpush3.bf16.msra.mxu1 %v869_v54 }
  0x9a   : > { %871 = vmatprep.subr.bf16.mxu1 %v1178_v0 }
  0x9d   : > { %873 = vmatpush3.bf16.msra.mxu1 %v872_v57 }
  0x9e   : > { %874 = vmatprep.subr.bf16.mxu1 %v1178_v0 }
  0x9f   : > { %843 = vmatpush3.bf16.xpose.msra.mxu0 %v842_v16 }
  0xa0   : > { %844 = vmatprep.subr.bf16.mxu0 %v1178_v0 }
  0xa1   : > { %876 = vmatpush3.bf16.msra.mxu1 %v875_v60 }
  0xa7   : > { %846 = vmatpush3.bf16.xpose.msra.mxu0 %v845_v19 }
  0xa8   : > { %847 = vmatprep.subr.bf16.mxu0 %v1178_v0 }
  0xaf   : > { %849 = vmatpush3.bf16.xpose.msra.mxu0 %v848_v22 }
  0xb0   : > { %850 = vmatprep.subr.bf16.mxu0 %v1178_v0 }
  0xb7   : > { %852 = vmatpush3.bf16.xpose.msra.mxu0 %v851_v25 }
  0xbe   : > { %792 = vmatmul.mubr.f32.vlgmr.msra.gmra.mrb[0].mxu0 %v321_v27 }
 0x191   : > { %v420_v30 = vpop.f32.mrb[0].mxu0 }
 0x192   : > { %v793_v31 = vpop.f32.mrb[1].mxu0  ;;  %v427_v32 = vsel %vm426_vm1, -inf, %v420_v30 }
 0x193   : > { %428 = vmax.xlane.f32.xlu0 %v427_v32 }
 0x220   : > { %v429_v48 = vpop.xlane.xlu0 %428 }
 0x221   : > { %v430_v49 = vsub.f32 %v427_v32, %v429_v48 }
 0x223   : > { %v431_v50 = vmul.f32 1.442695, %v430_v49 }
 0x225   : > { %959 = vpow2.f32 %v431_v50 }
 0x22f   : > { %v960_v51 = vpop.eup %959 }
 0x230   : > { %433 = vadd.xlane.f32.xlu0 %v960_v51 }
 0x2bd   : > { %v434_v61 = vpop.xlane.xlu0 %433 }
 0x2be   : > { %961 = vrcp.f32 %v434_v61 }
 0x2c8   : > { %v962_v62 = vpop.eup %961 }
 0x2c9   : > { %v436_v63 = vmul.f32 %v962_v62, %v960_v51 }
 0x2cb   : > { %827 = vmatmul.mubr.f32.vlgmr.msra.gmra.mrb[0].mxu1 %v436_v63  ;;  %437 = vst [vmem:[%s319_s27] sm:$0xff] %v436_v63 }
 0x2cc   : > { %1066 = shalt.err (!%p1063_p10)
}
 0x2cd   : > { %s1067_s9 = scalar_lea.hbm %s1484_s30, 128  ;;  %s1071_s1 = scalar_lea.hbm %s1563_s4, 256 }
 0x2ce   : > { %p1068_p7 = scmp.ne.s32.totalorder %s1484_s30, %s1067_s9  ;;  %p1072_p11 = scmp.lt.u32.totalorder %s1484_s30, %s1563_s4 }
 0x2cf   : > { %p1073_p2 = scmp.lt.u32.totalorder %s1071_s1, %s1067_s9  ;;  %p1075_p13 = scmp.lt.u32.totalorder %s1067_s9, %s1484_s30 }
 0x2d0   : > { %p1069_p1 = pnand %p1068_p7, %p1591_p5 }
 0x2d1   : > { %p1074_p3 = por %p1073_p2, %p1072_p11 }
 0x2d2   : > { %p1070_p0 = pneg %p1069_p1 }
 0x2d3   : > { %p1076_p6 = por %p1075_p13, %p1074_p3 }
 0x2d5   : > { %p1077_p8 = pnand %p1076_p6, %p1070_p0 }
 0x2d7   : > { %1080 = shalt.err (!%p1077_p8)
}
 0x2d8   : > { %884 = dma.vmem_to_hbm [thread:$0]  (%p1591_p5), %s544_s12, 128, %s1484_s30, %s515_s29  }
 0x2d9   : > { %s312_s11 = scalar_lea.vmem [#allocation8], %s1405_s24  ;;  %s1512_s17 = scalar_lea.hbm %s1562_s3, %s719_s26 }
 0x2da   : > { %s529_s21 = sshll.u32 %s312_s11, 4  ;;  %s510_s14 = scalar_lea.sflag [#allocation4], %s1402_s25  ;;  %s1505_s21 = int_to_ptr.vmem [resolvable:$true] %s529_s21 }
 0x2db   : > { %s1081_s13 = scalar_lea.vmem %s1505_s21, 128  ;;  %s1182_s24 = smov [#allocation8]  }
 0x2dc   : > { %p1082_p9 = scmp.ne.s32.totalorder %s1505_s21, %s1081_s13  ;;  %s1085_s30 = sshll.u32 %s1182_s24, 4  ;;  %s1086_s30 = int_to_ptr.vmem [resolvable:$false] %s1085_s30 }
 0x2dd   : > { %s1087_s18 = scalar_lea.vmem %s1086_s30, 256  ;;  %p1088_p10 = scmp.lt.s32.totalorder %s1505_s21, %s1086_s30 }
 0x2de   : > { %p1083_p12 = pnand %p1082_p9, %p1591_p5  ;;  %p1089_p7 = scmp.lt.s32.totalorder %s1087_s18, %s1081_s13 }
 0x2e0   : > { %p1084_p4 = pneg %p1083_p12  ;;  %p1090_p1 = por %p1089_p7, %p1088_p10 }
 0x2e2   : > { %p1091_p0 = pnand %p1090_p1, %p1084_p4 }
 0x39e   : > { %v504_v0 = vpop.f32.mrb[0].mxu1 }
 0x39f   : > { %508 = vst [vmem:[%s312_s11] sm:$0xff] %v504_v0  ;;  %v828_v1 = vpop.f32.mrb[1].mxu1 }
 0x3a0   : > { %1094 = shalt.err (!%p1091_p0)
}
 0x3a1   : > { %s1095_s25 = scalar_lea.hbm %s1512_s17, 128  ;;  %s1099_s29 = scalar_lea.hbm %s1562_s3, 256 }
 0x3a2   : > { %p1096_p11 = scmp.ne.s32.totalorder %s1512_s17, %s1095_s25  ;;  %p1100_p13 = scmp.lt.u32.totalorder %s1512_s17, %s1562_s3 }
 0x3a3   : > { %p1101_p6 = scmp.lt.u32.totalorder %s1099_s29, %s1095_s25  ;;  %p1103_p9 = scmp.lt.u32.totalorder %s1095_s25, %s1512_s17 }
 0x3a4   : > { %p1097_p2 = pnand %p1096_p11, %p1591_p5 }
 0x3a5   : > { %p1102_p8 = por %p1101_p6, %p1100_p13 }
 0x3a6   : > { %p1098_p3 = pneg %p1097_p2 }
 0x3a7   : > { %p1104_p12 = por %p1103_p9, %p1102_p8 }
 0x3a9   : > { %p1105_p4 = pnand %p1104_p12, %p1098_p3 }
 0x3ab   : > { %1108 = shalt.err (!%p1105_p4)
}
 0x3ac   : > { %883 = dma.vmem_to_hbm [thread:$0]  (%p1591_p5), %s1505_s21, 128, %s1512_s17, %s510_s14  }
 0x3ad PF: > { %s1592_s9 = sld [smem:[#allocation18_spill]]  ;;  %s555_s8 = sand.u32 1, %s1151_s15  }
 0x3ae   : > { %p1594_p7 = scmp.ge.s32.totalorder %s1171_s20, 2  ;;  %s556_s10 = scalar_lea.sflag [#allocation4], %s555_s8 }
 0x3b3   : > { %p1593_p10 = scmp.ne.s32.totalorder %s1592_s9, 0 }
 0x3b5   : > { %p898_p1 = pnand %p1594_p7, %p1593_p10 }
 0x3b7   : > { %1142 = dma.done.wait (!%p898_p1), %s556_s10, 128  }
 0x3b8   : > { %1144 = vsyncadd (!%p898_p1), %s556_s10, 4294967168  ;;  %s565_s1 = scalar_lea.sflag [#allocation10], %s555_s8 }
 0x3b9   : > { %1146 = dma.done.wait (!%p898_p1), %s565_s1, 128  }
 0x3ba   : > { %1148 = vsyncadd (!%p898_p1), %s565_s1, 4294967168  ;;  %s27_s20 = sadd.s32 1, %s1171_s20   ;;  %s1595_s28 = sld [smem:[#allocation15_spill]] }
 0x3bb   : > { %p24_p0 = scmp.ge.s32.totalorder %s27_s20, 4   ;;  %s1596_s17 = sld [smem:[#allocation17_spill]] }
 0x3bc   : > { %s1597_s23 = sld [smem:[#allocation16_spill]]  ;;  %s1598_s15 = smov %s1155_s16 }
 0x3bd   : > { %s1600_s18 = smov %s1167_s19  ;;  %26 = sbr.rel (!%p24_p0) target bundleno = 12 (0xc), region = 118 }
 0x3c0   : > { %s1599_s16 = smov %s1595_s28 }
 0x3c2   : > { %s1601_s19 = smov %s1597_s23 }
 0x3c4   :  { %570 = vsyncpa [#allocation3], 1 }
 0x3c5   :  { %572 = vsyncpa [#allocation3 + $0x1], 1 }
 0x3c6   :  { %573 = vsyncpa [#allocation6], 1 }
 0x3c7   :  { %575 = vsyncpa [#allocation6 + $0x1], 1 }
 0x3c8   :  { %576 = vsyncpa [#allocation4], 1 }
 0x3c9   :  { %578 = vsyncpa [#allocation4 + $0x1], 1 }
 0x3ca   :  { %579 = vsyncpa [#allocation10], 1 }
 0x3cb   :  { %581 = vsyncpa [#allocation10 + $0x1], 1 }

</bundles_post_ra>
